<compile_context>
chip_gen: v5e
topology: v5e:2x2
jax: 0.10.0
libtpu: 0.0.40
codegen_flags: <defaults>
</compile_context>

<pallas_src>
import functools
import math

import jax
import jax.numpy as jnp
from jax.experimental import pallas as pl
from jax.experimental.pallas import tpu as pltpu


_INV_SQRT2 = 0.7071067811865476
_SQRT_2_OVER_PI = 0.7978845608028654


def _round_up(a, b):
    return (a + b - 1) // b * b


@functools.lru_cache(maxsize=1)
def _vmem_capacity_bytes():
    """Per-core VMEM capacity; conservative fallback if the query is unavailable."""
    try:
        cap = getattr(pltpu.get_tpu_info(), "vmem_capacity_bytes", None)
        if cap:
            return int(cap)
    except Exception:
        pass
    return 64 * 1024 * 1024  # v7x per-TensorCore VMEM (most restrictive)


def _vmem_limit_bytes(footprint, cap):
    """Size the Mosaic scoped-VMEM limit from the actual footprint (+ headroom)."""
    limit = int(footprint * 1.25) + (8 << 20)
    limit = max(limit, 32 << 20)
    limit = min(limit, cap - (4 << 20))
    return int(limit)


def _effective_tn(dim_out, tn_req):
    """Lane-dense N tile: multiple of 128, <= padded dim_out; prefer an exact divisor
    (no wasted columns) if one exists within 128 of the request."""
    n128 = _round_up(dim_out, 128)
    t = max(128, (min(tn_req, n128) // 128) * 128)
    for cand in (t, t - 128):
        if cand >= 128 and n128 % cand == 0:
            return cand
    return t


def _pick_tk(dim_in, two_tn, tm, x_bytes, w_bytes, o_bytes, cap):
    """Largest K tile whose double-buffered footprint fits the VMEM budget.
    Returns dim_in (no K tiling) when the full-K W tile already fits."""

    def footprint(tk, with_acc):
        fp = (2 * tm * tk * x_bytes          # x blocks (double-buffered)
              + 2 * tk * two_tn * w_bytes    # W blocks (double-buffered)
              + 2 * two_tn * 4               # bias blocks
              + 2 * tm * (two_tn // 2) * o_bytes)  # output blocks
        if with_acc:
            fp += tm * two_tn * 4            # f32 accumulator scratch
        return fp

    budget = int(0.7 * cap)
    if footprint(dim_in, False) <= budget:
        return dim_in
    for tk in (2048, 1024, 512, 256, 128):
        if tk < dim_in and dim_in % tk == 0 and footprint(tk, True) <= budget:
            return tk
    return dim_in


def pack_geglu_params(w, b, *, tn, dtype=None):
    """Pre-pack torch-layout params once at model-load time.

    w: [2*dim_out, dim_in] (torch nn.Linear weight), b: [2*dim_out].
    Returns (w_pk [dim_in, nb*2*tn], b_pk [1, nb*2*tn]) where each N tile of
    width 2*tn is [Wx_tile | Wg_tile]; dim_out is zero-padded to a multiple of
    tn.  Pass dtype=jnp.bfloat16 to use the bf16 MXU path (the wrapper then
    also streams x/out in bf16); the bias stays f32 and is added in f32.
    """
    dim_out = w.shape[0] // 2
    dim_in = w.shape[1]
    n_pad = _round_up(dim_out, tn)
    nb = n_pad // tn

    wx = jnp.transpose(w[:dim_out, :])            # [K, N]
    wg = jnp.transpose(w[dim_out:, :])            # [K, N]
    bx = b[:dim_out]
    bg = b[dim_out:]

    pad_n = n_pad - dim_out
    if pad_n:
        wx = jnp.pad(wx, ((0, 0), (0, pad_n)))
        wg = jnp.pad(wg, ((0, 0), (0, pad_n)))
        bx = jnp.pad(bx, (0, pad_n))
        bg = jnp.pad(bg, (0, pad_n))

    w_pk = jnp.concatenate(
        [wx.reshape(dim_in, nb, tn), wg.reshape(dim_in, nb, tn)], axis=-1
    ).reshape(dim_in, nb * 2 * tn)
    b_pk = jnp.concatenate(
        [bx.reshape(nb, tn), bg.reshape(nb, tn)], axis=-1
    ).reshape(1, nb * 2 * tn)
    if dtype is not None:
        w_pk = w_pk.astype(dtype)
    return w_pk, b_pk


def _gelu_f32(g, approximate):
    """GELU on an f32 value.  approximate=False matches torch F.gelu default."""
    if approximate:
        # tanh / exp run on the EUP (separate VLIW slot) -> less VALU pressure.
        inner = _SQRT_2_OVER_PI * (g + 0.044715 * (g * g * g))
        return 0.5 * g * (1.0 + jnp.tanh(inner))
    return 0.5 * g * (1.0 + jax.lax.erf(g * _INV_SQRT2))


def _geglu_kernel(x_ref, w_ref, b_ref, o_ref, *, approximate):
    """One (tm x tn) output block: single fused matmul over full K + epilogue."""
    tn = o_ref.shape[-1]
    x = x_ref[...].astype(w_ref.dtype)                  # no-op when dtypes match
    acc = jnp.dot(x, w_ref[...], preferred_element_type=jnp.float32)
    acc = acc + b_ref[...].astype(jnp.float32)
    h, g = acc[:, :tn], acc[:, tn:]
    o_ref[...] = (h * _gelu_f32(g, approximate)).astype(o_ref.dtype)


def _geglu_kernel_ktiled(x_ref, w_ref, b_ref, o_ref, acc_ref, *, approximate):
    """K-tiled variant: f32 VMEM accumulator, epilogue on the last K step."""
    k = pl.program_id(2)

    @pl.when(k == 0)
    def _():
        acc_ref[...] = jnp.zeros_like(acc_ref)

    x = x_ref[...].astype(w_ref.dtype)
    acc_ref[...] += jnp.dot(x, w_ref[...], preferred_element_type=jnp.float32)

    @pl.when(k == pl.num_programs(2) - 1)
    def _():
        tn = o_ref.shape[-1]
        acc = acc_ref[...] + b_ref[...].astype(jnp.float32)
        h, g = acc[:, :tn], acc[:, tn:]
        o_ref[...] = (h * _gelu_f32(g, approximate)).astype(o_ref.dtype)


def _geglu_kernel_resident(x_ref, w_ref, b_ref, o_ref, *, approximate):
    """Whole packed W resident in VMEM; slice this block's [Wx_j | Wg_j] columns."""
    tn = o_ref.shape[-1]
    two_tn = 2 * tn
    j = pl.program_id(1)                                 # N is the fast grid axis
    start = pl.multiple_of(j * two_tn, two_tn)
    x = x_ref[...].astype(w_ref.dtype)
    acc = jnp.dot(x, w_ref[:, pl.ds(start, two_tn)],
                  preferred_element_type=jnp.float32)
    acc = acc + b_ref[:, pl.ds(start, two_tn)].astype(jnp.float32)
    h, g = acc[:, :tn], acc[:, tn:]
    o_ref[...] = (h * _gelu_f32(g, approximate)).astype(o_ref.dtype)


@functools.partial(
    jax.jit,
    static_argnames=("dim_out", "tm", "tn", "tk", "out_dtype", "approximate", "mode"),
)
def geglu_packed(x, w_pk, b_pk, *, dim_out, tm=128, tn=512, tk=None,
                 out_dtype=None, approximate=False, mode=None):
    """GEGLU forward on pre-packed weights (see pack_geglu_params).

    x: [..., dim_in] -> [..., dim_out] (out_dtype, default x.dtype).
    mode: None/"auto" (pick per shape & VMEM capacity), "stream", "resident".
    """
    dim_in = x.shape[-1]
    lead = x.shape[:-1]
    m = math.prod(lead) if lead else 1
    x2d = x.reshape(m, dim_in)

    if out_dtype is None:
        out_dtype = x.dtype

    # Stream activations in bf16 when the packed weights are bf16: x is the
    # restreamed operand, so this halves the dominant HBM traffic term.
    if w_pk.dtype == jnp.bfloat16 and x2d.dtype != jnp.bfloat16:
        x2d = x2d.astype(jnp.bfloat16)

    two_tn = 2 * tn
    assert w_pk.shape[0] == dim_in, "packed weight dim_in mismatch"
    assert w_pk.shape[1] % two_tn == 0, "tn must match pack_geglu_params(tn=...)"
    nb = w_pk.shape[1] // two_tn
    assert (nb - 1) * tn < dim_out <= nb * tn, "dim_out / tn / packing mismatch"
    assert b_pk.shape == (1, nb * two_tn), "packed bias shape mismatch"

    # No wrapper-side padding of x: Pallas masks the ragged last M / N blocks
    # (rows are independent, so garbage edge rows never reach valid output).
    tm_eff = min(tm, _round_up(m, 8))
    m_blocks = pl.cdiv(m, tm_eff)

    x_bytes = x2d.dtype.itemsize
    w_bytes = w_pk.dtype.itemsize
    b_bytes = b_pk.dtype.itemsize
    o_bytes = jnp.dtype(out_dtype).itemsize
    cap = _vmem_capacity_bytes()

    w_total = w_pk.size * w_bytes
    b_total = b_pk.size * b_bytes
    x_total = m * dim_in * x_bytes

    # Footprint of keeping the whole packed W (+bias) VMEM-resident.  Assumes
    # the pipeline still double-buffers it (pipeline_mode=pl.Buffered(1) would
    # halve the W term; left off for portability).
    resident_fp = (2 * w_total + 2 * b_total
                   + 2 * tm_eff * dim_in * x_bytes
                   + 2 * tm_eff * tn * o_bytes)

    if mode is None or mode == "auto":
        # Full-W residency (v5e/v6e, 128 MiB VMEM): x and out each touched once,
        # kernel becomes MXU-bound.  Capacity check keeps this off on v7x
        # (64 MiB/TC) unless the layer is small.
        mode = "resident" if (nb > 1 and resident_fp <= int(0.7 * cap)) else "stream"

    if mode == "resident":
        grid = (m_blocks, nb)                      # N fastest: x tile + W stay resident
        in_specs = [
            pl.BlockSpec((tm_eff, dim_in), lambda i, j: (i, 0)),
            pl.BlockSpec((dim_in, nb * two_tn), lambda i, j: (0, 0)),
            pl.BlockSpec((1, nb * two_tn), lambda i, j: (0, 0)),
        ]
        out_specs = pl.BlockSpec((tm_eff, tn), lambda i, j: (i, j))
        scratch = []
        kernel = functools.partial(_geglu_kernel_resident, approximate=approximate)
        dims = ("parallel", "parallel")
        footprint = resident_fp
    else:
        if tk is None:
            tk = _pick_tk(dim_in, two_tn, tm_eff, x_bytes, w_bytes, o_bytes, cap)
        if tk < dim_in:
            # K-tiled streaming: bounds the VMEM footprint for large dim_in
            # (v7x: 64 MiB/TC) without shrinking tm/tn.
            kt = dim_in // tk
            grid = (nb, m_blocks, kt)
            in_specs = [
                pl.BlockSpec((tm_eff, tk), lambda j, i, k: (i, k)),
                pl.BlockSpec((tk, two_tn), lambda j, i, k: (k, j)),
                pl.BlockSpec((1, two_tn), lambda j, i, k: (0, j)),
            ]
            out_specs = pl.BlockSpec((tm_eff, tn), lambda j, i, k: (i, j))
            scratch = [pltpu.VMEM((tm_eff, two_tn), jnp.float32)]
            kernel = functools.partial(_geglu_kernel_ktiled, approximate=approximate)
            dims = ("parallel", "parallel", "arbitrary")
            footprint = (2 * tm_eff * tk * x_bytes + 2 * tk * two_tn * w_bytes
                         + 2 * two_tn * b_bytes + 2 * tm_eff * tn * o_bytes
                         + tm_eff * two_tn * 4)
        else:
            # Pick the resident operand per shape: M-fast keeps the W tile
            # resident (x restreamed nb times); N-fast keeps the x tile
            # resident (W restreamed m_blocks times).
            if nb * x_total + w_total <= x_total + m_blocks * w_total:
                grid = (nb, m_blocks)              # W-resident, M fastest
                x_map = lambda j, i: (i, 0)
                w_map = lambda j, i: (0, j)
                o_map = lambda j, i: (i, j)
            else:
                grid = (m_blocks, nb)              # x-resident, N fastest
                x_map = lambda i, j: (i, 0)
                w_map = lambda i, j: (0, j)
                o_map = lambda i, j: (i, j)
            in_specs = [
                # If the x DMA is latency- (not bandwidth-) limited, bump this
                # spec to pipeline_mode=pl.Buffered(3).
                pl.BlockSpec((tm_eff, dim_in), x_map),
                pl.BlockSpec((dim_in, two_tn), w_map),
                pl.BlockSpec((1, two_tn), w_map),
            ]
            out_specs = pl.BlockSpec((tm_eff, tn), o_map)
            scratch = []
            kernel = functools.partial(_geglu_kernel, approximate=approximate)
            dims = ("parallel", "parallel")
            footprint = (2 * tm_eff * dim_in * x_bytes + 2 * dim_in * two_tn * w_bytes
                         + 2 * two_tn * b_bytes + 2 * tm_eff * tn * o_bytes)

    out2d = pl.pallas_call(
        kernel,
        out_shape=jax.ShapeDtypeStruct((m, dim_out), out_dtype),
        grid_spec=pltpu.PrefetchScalarGridSpec(
            num_scalar_prefetch=0,
            grid=grid,
            in_specs=in_specs,
            out_specs=out_specs,
            scratch_shapes=scratch,
        ),
        compiler_params=pltpu.CompilerParams(
            dimension_semantics=dims,
            # Generation-aware limit sized from the actual footprint.
            vmem_limit_bytes=_vmem_limit_bytes(footprint, cap),
        ),
    )(x2d, w_pk, b_pk)

    return out2d.reshape(*lead, dim_out)


def geglu(x, w, b, *, tn=512, weight_dtype=None, **kwargs):
    """Convenience wrapper from torch nn.Linear layout (packs per call).

    Production: call pack_geglu_params once at load time (optionally with
    dtype=jnp.bfloat16) and call geglu_packed directly, so the weight
    transpose/concat is not on the per-step hot path.
    """
    dim_out = w.shape[0] // 2
    tn_eff = _effective_tn(dim_out, tn)
    w_pk, b_pk = pack_geglu_params(w, b, tn=tn_eff, dtype=weight_dtype)
    return geglu_packed(x, w_pk, b_pk, dim_out=dim_out, tn=tn_eff, **kwargs)


def geglu_ref(x, w, b):
    """Pure-JAX reference matching the PyTorch module (exact GELU, f32 matmul)."""
    proj = jnp.einsum("...k,nk->...n", x, w,
                      precision=jax.lax.Precision.HIGHEST) + b
    dim_out = w.shape[0] // 2
    h, g = proj[..., :dim_out], proj[..., dim_out:]
    return h * jax.nn.gelu(g, approximate=False)


if __name__ == "__main__":
    B, S, DIM_IN, DIM_OUT = 2, 8, 32, 32

    key = jax.random.PRNGKey(0)
    kx, kw, kb, kx2, kw2, kb2 = jax.random.split(key, 6)

    # ----- Main check: module-sized input, f32 weights, auto mode. -----
    x = jax.random.normal(kx, (B, S, DIM_IN), dtype=jnp.float32)
    bound = 1.0 / math.sqrt(DIM_IN)
    w = jax.random.uniform(kw, (2 * DIM_OUT, DIM_IN), jnp.float32, -bound, bound)
    b = jax.random.uniform(kb, (2 * DIM_OUT,), jnp.float32, -bound, bound)

    tn = _effective_tn(DIM_OUT, 512)
    w_pk, b_pk = pack_geglu_params(w, b, tn=tn)                 # load-time packing
    out = geglu_packed(x, w_pk, b_pk, dim_out=DIM_OUT, tn=tn)
    out = jax.block_until_ready(out)

    ref = geglu_ref(x, w, b)
    assert out.shape == (B, S, DIM_OUT), out.shape
    assert jnp.allclose(out, ref, atol=2e-5, rtol=2e-5), "mismatch vs reference"

    # ----- Path checks (still small): ragged M (m=70), multiple N tiles. -----
    DIN2, DOUT2 = 256, 256
    x2 = jax.random.normal(kx2, (5, 14, DIN2), dtype=jnp.float32)
    bound2 = 1.0 / math.sqrt(DIN2)
    w2 = jax.random.uniform(kw2, (2 * DOUT2, DIN2), jnp.float32, -bound2, bound2)
    b2 = jax.random.uniform(kb2, (2 * DOUT2,), jnp.float32, -bound2, bound2)
    ref2 = geglu_ref(x2, w2, b2)
    w2_pk, b2_pk = pack_geglu_params(w2, b2, tn=128)

    # (a) fully VMEM-resident packed-W path (v5e/v6e style), nb=2 N tiles.
    out_res = geglu_packed(x2, w2_pk, b2_pk, dim_out=DOUT2, tn=128, mode="resident")
    assert jnp.allclose(out_res, ref2, atol=2e-4, rtol=2e-4), "mismatch (resident path)"

    # (b) K-tiled streaming path (bounded VMEM footprint, v7x style).
    out_kt = geglu_packed(x2, w2_pk, b2_pk, dim_out=DOUT2, tn=128, tk=128, mode="stream")
    assert jnp.allclose(out_kt, ref2, atol=2e-4, rtol=2e-4), "mismatch (K-tiled path)"

    # (c) bf16 packed weights + bf16 activations/output (halved HBM traffic).
    w2_bf, b2_bf = pack_geglu_params(w2, b2, tn=128, dtype=jnp.bfloat16)
    out_bf = geglu_packed(x2, w2_bf, b2_bf, dim_out=DOUT2, tn=128,
                          out_dtype=jnp.bfloat16)
    assert jnp.allclose(out_bf.astype(jnp.float32), ref2, atol=0.1, rtol=0.1), \
        "mismatch (bf16 path)"

    jax.block_until_ready((out_res, out_kt, out_bf))
    print("KERNEL_OK")
</pallas_src>

<mosaic_0001>
module attributes {stable_mosaic.version = 11 : i64} {
  func.func @_geglu_kernel(%arg0: i32, %arg1: i32, %arg2: memref<16x32xf32, #tpu.memory_space<vmem>>, %arg3: memref<32x256xf32, #tpu.memory_space<vmem>>, %arg4: memref<1x256xf32, #tpu.memory_space<vmem>>, %arg5: memref<16x128xf32, #tpu.memory_space<vmem>>) attributes {dimension_semantics = [#tpu.dimension_semantics<parallel>, #tpu.dimension_semantics<parallel>], iteration_bounds = array<i64: 1, 1>, scalar_prefetch = 0 : i64, scratch_operands = 0 : i64, tpu.core_type = #tpu.core_type<tc>, window_params = [{transform_indices = @transform_0, window_bounds = array<i64: 16, 32>}, {transform_indices = @transform_1, window_bounds = array<i64: 32, 256>}, {transform_indices = @transform_2, window_bounds = array<i64: 1, 256>}, {transform_indices = @transform_3, window_bounds = array<i64: 16, 128>}]} {
    %c0 = arith.constant 0 : index
    %c0_0 = arith.constant 0 : index
    %0 = vector.load %arg2[%c0, %c0_0] : memref<16x32xf32, #tpu.memory_space<vmem>>, vector<16x32xf32>
    %c0_1 = arith.constant 0 : index
    %c0_2 = arith.constant 0 : index
    %1 = vector.load %arg3[%c0_1, %c0_2] : memref<32x256xf32, #tpu.memory_space<vmem>>, vector<32x256xf32>
    %cst = arith.constant dense<0.000000e+00> : vector<16x256xf32>
    %2 = tpu.matmul %0, %1, %cst {dimension_numbers = #tpu.dot_dimension_numbers<[1], [0], [0], [1], [0, 0, 1, 1], [], []>} : vector<16x32xf32>, vector<32x256xf32>, vector<16x256xf32> -> vector<16x256xf32>
    %c0_3 = arith.constant 0 : index
    %c0_4 = arith.constant 0 : index
    %3 = vector.load %arg4[%c0_3, %c0_4] : memref<1x256xf32, #tpu.memory_space<vmem>>, vector<1x256xf32>
    %4 = vector.broadcast %3 : vector<1x256xf32> to vector<16x256xf32>
    %5 = arith.addf %2, %4 : vector<16x256xf32>
    %6 = vector.extract_strided_slice %5 {offsets = [0, 0], sizes = [16, 128], strides = [1, 1]} : vector<16x256xf32> to vector<16x128xf32>
    %7 = vector.extract_strided_slice %5 {offsets = [0, 128], sizes = [16, 128], strides = [1, 1]} : vector<16x256xf32> to vector<16x128xf32>
    %cst_5 = arith.constant 5.000000e-01 : f32
    %8 = vector.broadcast %cst_5 : f32 to vector<16x128xf32>
    %9 = arith.mulf %8, %7 : vector<16x128xf32>
    %cst_6 = arith.constant 0.707106769 : f32
    %10 = vector.broadcast %cst_6 : f32 to vector<16x128xf32>
    %11 = arith.mulf %7, %10 : vector<16x128xf32>
    %12 = math.erf %11 : vector<16x128xf32>
    %cst_7 = arith.constant 1.000000e+00 : f32
    %13 = vector.broadcast %cst_7 : f32 to vector<16x128xf32>
    %14 = arith.addf %13, %12 : vector<16x128xf32>
    %15 = arith.mulf %9, %14 : vector<16x128xf32>
    %16 = arith.mulf %6, %15 : vector<16x128xf32>
    %c0_8 = arith.constant 0 : index
    %c0_9 = arith.constant 0 : index
    %17 = vector.load %arg5[%c0_8, %c0_9] : memref<16x128xf32, #tpu.memory_space<vmem>>, vector<16x128xf32>
    tpu.vector_store %arg5[%c0_8, %c0_9], %16 {strides = array<i32>} : memref<16x128xf32, #tpu.memory_space<vmem>>, vector<16x128xf32>,
    return
  }
  func.func @transform_0(%arg0: i32, %arg1: i32) -> (i32, i32) {
    %c0_i32 = arith.constant 0 : i32
    %c0_i32_0 = arith.constant 0 : i32
    return %arg1, %c0_i32 : i32, i32
  }
  func.func @transform_1(%arg0: i32, %arg1: i32) -> (i32, i32) {
    %c0_i32 = arith.constant 0 : i32
    %c0_i32_0 = arith.constant 0 : i32
    return %c0_i32, %arg0 : i32, i32
  }
  func.func @transform_2(%arg0: i32, %arg1: i32) -> (i32, i32) {
    %c0_i32 = arith.constant 0 : i32
    %c0_i32_0 = arith.constant 0 : i32
    return %c0_i32, %arg0 : i32, i32
  }
  func.func @transform_3(%arg0: i32, %arg1: i32) -> (i32, i32) {
    %c0_i32 = arith.constant 0 : i32
    return %arg1, %arg0 : i32, i32
  }
}

</mosaic_0001>

<bundles_post_ra>
// kernel: geglu_packed.1
= control target key start
LH: loop header
LB: loop body
LE: loop exit
PB: predicated region body
PF: predicated region fallthrough
CT: control target
= control target key end

     0   :  { %8 = vsyncpa [#allocation3], 0  ;;  %s393_s0 = inlined_call_operand.hbm [shape: f32[16,32], index: 0, kind: input, shape index: {}]   ;;  %s394_s1 = inlined_call_operand.hbm [shape: f32[32,256], index: 1, kind: input, shape index: {}]   ;;  %s395_s2 = inlined_call_operand.vmem [shape: f32[1,256], index: 2, kind: input, shape index: {}]   ;;  %s396_s3 = inlined_call_operand.hbm [shape: f32[16,32], index: 3, kind: output, shape index: {}]  }
   0x1   :  { %9 = vsyncpa [#allocation6], 0 }
   0x2   :  { %10 = vsyncpa [#allocation4], 0  ;;  %s15_s14 = sshll.u32 %s393_s0, 4  ;;  %s331_s15 = smov [#allocation2]   ;;  %s16_s14 = int_to_ptr.hbm [resolvable:$true] %s15_s14 }
   0x3   :  { %s17_s16 = sshll.u32 %s331_s15, 4  ;;  %s28_s19 = sshll.u32 %s394_s1, 4  ;;  %s18_s16 = int_to_ptr.vmem [resolvable:$true] %s17_s16  ;;  %s29_s19 = int_to_ptr.hbm [resolvable:$true] %s28_s19 }
   0x4   :  { %s332_s20 = smov 128   ;;  %s333_s21 = smov 8  }
   0x5   :  { %23 = dma.hbm_to_vmem [thread:$0]  %s16_s14, 256, %s18_s16, [#allocation3], %s332_s20, %s332_s20, %s333_s21  }
   0x6   :  { %s334_s22 = smov [#allocation5]   ;;  %s335_s24 = smov 256  }
   0x7   :  { %s30_s23 = sshll.u32 %s334_s22, 4  ;;  %s336_s0 = smov 16   ;;  %s31_s23 = int_to_ptr.vmem [resolvable:$true] %s30_s23 }
   0x8   :  { %36 = dma.hbm_to_vmem [thread:$0]  %s29_s19, 1024, %s31_s23, [#allocation6], %s335_s24, %s335_s24, %s336_s0  }
   0x9   :  { %325 = dma.done.wait [#allocation3], 256  }
   0xa   :  { %326 = vsyncadd [#allocation3], 4294967040 }
   0xb   :  { %327 = dma.done.wait [#allocation6], 1024  }
   0xc   :  { %328 = vsyncadd [#allocation6], 4294966272  ;;  %v56_v0 = vld [vmem:[#allocation5 + $0x38] sm:$0xff]  ;;  %v54_v1 = vld [vmem:[#allocation5 + $0x28] sm:$0xff]  ;;  %vm63_vm0 = vcmask 261120   ;;  %s214_s29 = sshll.u32 %s396_s3, 4  ;;  %s215_s29 = int_to_ptr.hbm [resolvable:$true] %s214_s29 }
   0xd   :  { %105 = vmatpush.msra.mxu1 %v56_v0  ;;  %238 = vmatpush.msra.mxu3 %v56_v0  ;;  %v52_v2 = vld [vmem:[#allocation5 + $0x18] sm:$0xff]  ;;  %v55_v3 = vld [vmem:[#allocation5 + $0x30] sm:$0xff]  ;;  %v53_v4 = vld [vmem:[#allocation5 + $0x20] sm:$0xff] }
   0xe   :  { %v50_v5 = vld [vmem:[#allocation5 + $0x8] sm:$0xff]  ;;  %82 = vmatpush.msra.mxu0 %v55_v3  ;;  %234 = vmatpush.msra.mxu2 %v55_v3  ;;  %v47_v6 = vld [vmem:[#allocation2] sm:$0xff]  ;;  %v48_v7 = vld [vmem:[#allocation2 + $0x8] sm:$0xff] }
   0xf   :  { %106 = vmatpush.msra.mxu1 %v54_v1  ;;  %239 = vmatpush.msra.mxu3 %v54_v1  ;;  %v51_v8 = vld [vmem:[#allocation5 + $0x10] sm:$0xff]  ;;  %v49_v9 = vld [vmem:[#allocation5] sm:$0xff] }
  0x10   :  { %83 = vmatpush.msra.mxu0 %v53_v4  ;;  %235 = vmatpush.msra.mxu2 %v53_v4  ;;  %v370_v10 = vld [vmem:[%s395_s2] sm:$0x3]  ;;  %s337_s2 = smov [#allocation7]  }
  0x11   :  { %107 = vmatpush.msra.mxu1 %v52_v2  ;;  %240 = vmatpush.msra.mxu3 %v52_v2  ;;  %v60_v11 = vperm.slane %v370_v10, 1  ;;  %s212_s26 = sshll.u32 %s337_s2, 4  ;;  %s213_s26 = int_to_ptr.vmem [resolvable:$true] %s212_s26 }
  0x12   :  { %84 = vmatpush.msra.mxu0 %v51_v8  ;;  %236 = vmatpush.msra.mxu2 %v51_v8 }
  0x13   :  { %108 = vmatpush.msra.mxu1 %v50_v5  ;;  %241 = vmatpush.msra.mxu3 %v50_v5 }
  0x14   :  { %230 = vmatmul.msk.f32.vlgmr.msra.gmra.mxu1 %vm63_vm0, %v47_v6  ;;  %231 = vmatmul.msk.f32.vlgmr.msra.gmra.mxu3 %vm63_vm0, %v48_v7 }
  0x15   :  { %85 = vmatpush.msra.mxu0 %v49_v9  ;;  %237 = vmatpush.msra.mxu2 %v49_v9 }
  0x16   :  { %228 = vmatmul.msk.f32.vlgmr.msra.gmra.mxu0 %vm63_vm0, %v47_v6  ;;  %229 = vmatmul.msk.f32.vlgmr.msra.gmra.mxu2 %vm63_vm0, %v48_v7 }
  0x91   :  { %v110_v12 = vpop.f32.mrf.mxu1 }
  0x92   :  { %v373_v13 = vadd.f32 %v110_v12, %v60_v11 }
  0x94   :  { %v118_v14 = vmul.f32 0.70710677, %v373_v13 }
  0x96   :  { %v120_v15 = vmul.f32 %v118_v14, %v118_v14 }
  0x97   :  { %v113_v16 = vpop.f32.mrf.mxu3 }
  0x98   :  { %v121_v17 = vmin.f32 %v120_v15, 16.0  ;;  %v376_v18 = vadd.f32 %v113_v16, %v60_v11  ;;  %v59_v16 = vperm.slane %v370_v10, 0 }
  0x9a   :  { %v122_v19 = vmul.f32 2.1237322e-06, %v121_v17  ;;  %v133_v20 = vmul.f32 3.8918573e-05, %v121_v17  ;;  %v379_v21 = vmul.f32 0.70710677, %v376_v18 }
  0x9c   :  { %v123_v22 = vadd.f32 0.00028619796, %v122_v19  ;;  %v134_v23 = vadd.f32 0.001143296, %v133_v20  ;;  %v160_v24 = vmul.f32 %v379_v21, %v379_v21 }
  0x9e   :  { %v124_v25 = vmul.f32 %v123_v22, %v121_v17  ;;  %v135_v26 = vmul.f32 %v134_v23, %v121_v17  ;;  %v161_v27 = vmin.f32 %v160_v24, 16.0  ;;  %v87_v22 = vpop.f32.mrf.mxu0 }
  0xa0   :  { %v136_v28 = vadd.f32 0.014752088, %v135_v26  ;;  %v125_v29 = vadd.f32 0.0036580483, %v124_v25  ;;  %v162_v30 = vmul.f32 2.1237322e-06, %v161_v27  ;;  %v88_v26 = vadd.f32 %v87_v22, %v59_v16 }
  0xa1   :  { %v173_v31 = vmul.f32 3.8918573e-05, %v161_v27  ;;  %v116_v25 = vmul.f32 0.5, %v373_v13 }
  0xa2   :  { %v137_v32 = vmul.f32 %v136_v28, %v121_v17  ;;  %v163_v33 = vadd.f32 0.00028619796, %v162_v30  ;;  %v126_v36 = vmul.f32 %v125_v29, %v121_v17 }
  0xa3   :  { %v174_v34 = vadd.f32 0.001143296, %v173_v31 }
  0xa4   :  { %v138_v35 = vadd.f32 0.112945676, %v137_v32  ;;  %v164_v37 = vmul.f32 %v163_v33, %v161_v27  ;;  %v127_v43 = vadd.f32 0.05243302, %v126_v36  ;;  %v90_v33 = vpop.f32.mrf.mxu2 }
  0xa5   :  { %v175_v38 = vmul.f32 %v174_v34, %v161_v27  ;;  %v91_v36 = vadd.f32 %v90_v33, %v59_v16 }
  0xa6   :  { %v139_v39 = vmul.f32 %v138_v35, %v121_v17  ;;  %v165_v42 = vadd.f32 0.0036580483, %v164_v37  ;;  %v128_v49 = vmul.f32 %v127_v43, %v121_v17  ;;  %v117_v35 = vmul.f32 0.5, %v376_v18 }
  0xa7   :  { %v176_v40 = vadd.f32 0.014752088, %v175_v38 }
  0xa8   :  { %v140_v41 = vadd.f32 0.4994258, %v139_v39  ;;  %v166_v48 = vmul.f32 %v165_v42, %v161_v27  ;;  %v129_v53 = vadd.f32 0.18741608, %v128_v49 }
  0xa9   :  { %v177_v44 = vmul.f32 %v176_v40, %v161_v27 }
  0xaa   :  { %v141_v45 = vmul.f32 %v140_v41, %v121_v17  ;;  %v167_v52 = vadd.f32 0.05243302, %v166_v48  ;;  %v130_v58 = vmul.f32 %v129_v53, %v121_v17 }
  0xab   :  { %v178_v46 = vadd.f32 0.112945676, %v177_v44 }
  0xac   :  { %v142_v47 = vadd.f32 1.0, %v141_v45  ;;  %v168_v57 = vmul.f32 %v167_v52, %v161_v27  ;;  %v131_v63 = vadd.f32 1.1283791, %v130_v58 }
  0xad   :  { %v179_v50 = vmul.f32 %v178_v46, %v161_v27 }
  0xae   :  { %249 = vrcp.f32 %v142_v47  ;;  %v154_v61 = vand.u32 2147483648, %v142_v47  ;;  %v169_v62 = vadd.f32 0.18741608, %v168_v57  ;;  %v152_v1 = vand.u32 2147483647, %v142_v47 }
  0xaf   :  { %v180_v51 = vadd.f32 0.4994258, %v179_v50  ;;  %vm148_vm2 = vweird.f32 %v142_v47  ;;  %v132_v7 = vmul.f32 %v131_v63, %v118_v14 }
  0xb0   :  { %v155_v4 = vor.u32 1.1754944e-38, %v154_v61  ;;  %v170_v5 = vmul.f32 %v169_v62, %v161_v27  ;;  %vm153_vm4 = vcmp.eq.f32.partialorder %v152_v1, 8.507059e+37 }
  0xb1   :  { %v181_v54 = vmul.f32 %v180_v51, %v161_v27 }
  0xb2   :  { %v171_v17 = vadd.f32 1.1283791, %v170_v5 }
  0xb3   :  { %v182_v55 = vadd.f32 1.0, %v181_v54 }
  0xb4   :  { %v250_v56 = vpop.eup %249  ;;  %v172_v28 = vmul.f32 %v171_v17, %v379_v21 }
  0xb5   :  { %v144_v59 = vmul.f32 %v250_v56, %v142_v47  ;;  %251 = vrcp.f32 %v182_v55  ;;  %vm149_vm1 = vweird.f32 %v250_v56  ;;  %v194_v15 = vand.u32 2147483648, %v182_v55 }
  0xb6   :  { %vm150_vm3 = vmor %vm148_vm2, %vm149_vm1  ;;  %v192_v20 = vand.u32 2147483647, %v182_v55  ;;  %vm188_vm6 = vweird.f32 %v182_v55 }
  0xb7   :  { %v145_v60 = vsub.f32 1.0, %v144_v59  ;;  %v195_v14 = vor.u32 1.1754944e-38, %v194_v15 }
  0xb8   :  { %vm193_vm8 = vcmp.eq.f32.partialorder %v192_v20, 8.507059e+37 }
  0xb9   :  { %v146_v0 = vmul.f32 %v250_v56, %v145_v60 }
  0xbb   :  { %v252_v2 = vpop.eup %251  ;;  %v147_v3 = vadd.f32 %v250_v56, %v146_v0 }
  0xbc   :  { %v184_v6 = vmul.f32 %v252_v2, %v182_v55  ;;  %vm189_vm5 = vweird.f32 %v252_v2 }
  0xbd   :  { %v151_v8 = vsel %vm150_vm3, %v250_v56, %v147_v3  ;;  %vm190_vm7 = vmor %vm188_vm6, %vm189_vm5 }
  0xbe   :  { %v156_v9 = vsel %vm153_vm4, %v155_v4, %v151_v8  ;;  %v185_v11 = vsub.f32 1.0, %v184_v6 }
  0xbf   :  { %v157_v12 = vmul.f32 %v156_v9, %v132_v7 }
  0xc0   :  { %v186_v19 = vmul.f32 %v252_v2, %v185_v11 }
  0xc1   :  { %v232_v23 = vclamps-f32 %v157_v12, 1.0 }
  0xc2   :  { %v187_v24 = vadd.f32 %v252_v2, %v186_v19 }
  0xc3   :  { %v200_v27 = vadd.f32 1.0, %v232_v23 }
  0xc4   :  { %v191_v29 = vsel %vm190_vm7, %v252_v2, %v187_v24 }
  0xc5   :  { %v196_v30 = vsel %vm193_vm8, %v195_v14, %v191_v29  ;;  %v202_v10 = vmul.f32 %v200_v27, %v116_v25 }
  0xc6   :  { %v197_v31 = vmul.f32 %v196_v30, %v172_v28 }
  0xc7   :  { %v204_v32 = vmul.f32 %v202_v10, %v88_v26 }
  0xc8   :  { %v233_v34 = vclamps-f32 %v197_v31, 1.0 }
  0xc9   :  { %206 = vst [vmem:[#allocation7] sm:$0xff] %v204_v32 }
  0xca   :  { %v201_v37 = vadd.f32 1.0, %v233_v34 }
  0xcc   :  { %v203_v13 = vmul.f32 %v201_v37, %v117_v35 }
  0xce   :  { %v205_v21 = vmul.f32 %v203_v13, %v91_v36 }
  0xd0   :  { %207 = vst [vmem:[#allocation7 + $0x8] sm:$0xff] %v205_v21 }
  0xd1   :  { %220 = dma.vmem_to_hbm [thread:$0]  %s213_s26, 256, %s215_s29, [#allocation4], %s332_s20, %s332_s20, %s333_s21  }
  0xd2   :  { %329 = dma.done.wait [#allocation4], 256  }
  0xd3   :  { %330 = vsyncadd [#allocation4], 4294967040 }
  0xd4   :  { %225 = vsyncpa [#allocation3], 1 }
  0xd5   :  { %226 = vsyncpa [#allocation6], 1 }
  0xd6   :  { %227 = vsyncpa [#allocation4], 1 }

</bundles_post_ra>
